<compile_context>
chip_gen: v7x
topology: tpu7x:2x2x1
jax: 0.10.0
libtpu: 0.0.40
codegen_flags: <defaults>
</compile_context>

<pallas_src>
import functools

import jax
import jax.numpy as jnp
import numpy as np
from jax.experimental import pallas as pl
from jax.experimental.pallas import tpu as pltpu


def _round_up(x, m):
    return ((x + m - 1) // m) * m


# ---------------------------------------------------------------------------
# Graph preprocessing (done ONCE, outside the per-forward hot path).
# ---------------------------------------------------------------------------

def build_lightgcn_graph(R, n_users, n_items):
    """Returns (adj_int8 [Np,Np] exact 0/1, d_inv_sqrt [Np,1] f32, N).

    Np is N rounded up to a multiple of 128 so kernel tiles always divide;
    padded rows/cols are zero and their d^{-1/2} is zero, so they contribute
    nothing and are sliced off at the end.
    R is assumed binary (implicit-feedback interactions), as in LightGCN.
    """
    N = n_users + n_items
    Np = _round_up(max(N, 128), 128)
    A = jnp.zeros((Np, Np), jnp.float32)
    A = A.at[:n_users, n_users:N].set(R)
    A = A.at[n_users:N, :n_users].set(R.T)
    rowsum = jnp.sum(A, axis=1)
    d_inv_sqrt = jnp.where(rowsum > 0, rowsum ** -0.5, 0.0).astype(jnp.float32)
    adj_i8 = A.astype(jnp.int8)                        # exact 0/1, 1 byte/elem
    return adj_i8, d_inv_sqrt.reshape(Np, 1), N


# ---------------------------------------------------------------------------
# Path A: adjacency resident in VMEM across all layers (one pallas_call).
# ---------------------------------------------------------------------------

def _resident_kernel(adj_ref, dinv_ref, e0_ref, out_ref, *, n_layers, alpha):
    adj = adj_ref[...].astype(jnp.bfloat16)            # int8 0/1 -> bf16 once, in VMEM
    dinv = dinv_ref[...]                               # [Np, 1] f32
    ego = e0_ref[...]                                  # [Np, Dp] f32 (stays f32 between layers)
    acc = ego
    for _ in range(n_layers):                          # static unroll (n_layers is small)
        operand = (ego * dinv).astype(jnp.bfloat16)    # pre-scale rows by d_k^{-1/2}
        mm = jnp.dot(adj, operand, preferred_element_type=jnp.float32)
        ego = mm * dinv                                # post-scale rows by d_i^{-1/2}
        acc = acc + ego
    out_ref[...] = acc * alpha


def _resident_forward(adj_i8, dinv2d, e0p, n_layers, alpha, vmem_est_bytes):
    Np, Dp = e0p.shape
    kern = functools.partial(_resident_kernel, n_layers=n_layers, alpha=alpha)
    compiler_params = None
    if vmem_est_bytes > 12 * (1 << 20):
        # Scoped VMEM default != physical; raise it when the resident adjacency is big.
        compiler_params = pltpu.CompilerParams(
            vmem_limit_bytes=int(min(vmem_est_bytes * 1.3 + (4 << 20), 60 * (1 << 20))))
    return pl.pallas_call(
        kern,
        out_shape=jax.ShapeDtypeStruct((Np, Dp), jnp.float32),
        in_specs=[pl.BlockSpec(memory_space=pltpu.MemorySpace.VMEM)] * 3,
        out_specs=pl.BlockSpec(memory_space=pltpu.MemorySpace.VMEM),
        compiler_params=compiler_params,
    )(adj_i8, dinv2d, e0p)


# ---------------------------------------------------------------------------
# Path B: streamed tiled per-layer propagation (scales to any N).
# ---------------------------------------------------------------------------

def _streamed_layer_kernel(adj_ref, dinv_i_ref, dinv_k_ref, ego_ref, acc_in_ref,
                           ego_out_ref, acc_out_ref, mm_acc):
    """One (row_block, k_block) grid step of ego_{l+1} = D^-1/2 A D^-1/2 ego_l."""
    k = pl.program_id(1)

    @pl.when(k == 0)
    def _():
        mm_acc[...] = jnp.zeros_like(mm_acc)

    adj = adj_ref[...].astype(jnp.bfloat16)                              # int8 0/1 -> bf16
    operand = (ego_ref[...].astype(jnp.float32) * dinv_k_ref[...]).astype(jnp.bfloat16)
    mm_acc[...] += jnp.dot(adj, operand, preferred_element_type=jnp.float32)

    @pl.when(k == pl.num_programs(1) - 1)
    def _():
        new_ego = mm_acc[...] * dinv_i_ref[...]                          # f32
        ego_out_ref[...] = new_ego.astype(ego_out_ref.dtype)             # bf16 MXU operand next layer
        acc_out_ref[...] = acc_in_ref[...] + new_ego                     # f32 running layer-sum


def _streamed_layer(adj_i8, dinv2d, ego_bf16, acc_f32, *, bm, bk):
    Np = adj_i8.shape[0]
    Dp = ego_bf16.shape[1]
    grid = (Np // bm, Np // bk)                     # reduction axis last
    ego_out, acc_out = pl.pallas_call(
        _streamed_layer_kernel,
        out_shape=(jax.ShapeDtypeStruct((Np, Dp), jnp.bfloat16),
                   jax.ShapeDtypeStruct((Np, Dp), jnp.float32)),
        grid_spec=pltpu.PrefetchScalarGridSpec(
            num_scalar_prefetch=0,
            grid=grid,
            in_specs=[
                pl.BlockSpec((bm, bk), lambda i, k: (i, k)),   # int8 adjacency tile (dominant stream)
                pl.BlockSpec((bm, 1), lambda i, k: (i, 0)),    # d_i^{-1/2}
                pl.BlockSpec((bk, 1), lambda i, k: (k, 0)),    # d_k^{-1/2}
                pl.BlockSpec((bk, Dp), lambda i, k: (k, 0)),   # ego_l rows for this k block (bf16)
                pl.BlockSpec((bm, Dp), lambda i, k: (i, 0)),   # running layer-sum (resident over k)
            ],
            out_specs=[
                pl.BlockSpec((bm, Dp), lambda i, k: (i, 0)),   # ego_{l+1} (bf16)
                pl.BlockSpec((bm, Dp), lambda i, k: (i, 0)),   # new running layer-sum (f32)
            ],
            scratch_shapes=[pltpu.VMEM((bm, Dp), jnp.float32)],
        ),
        compiler_params=pltpu.CompilerParams(
            # Row blocks independent -> megacore split on v7x; k carries the accumulator.
            dimension_semantics=("parallel", "arbitrary"),
        ),
    )(adj_i8, dinv2d, dinv2d, ego_bf16, acc_f32)
    return ego_out, acc_out


# ---------------------------------------------------------------------------
# Forward.
# ---------------------------------------------------------------------------

def lightgcn_forward(adj_i8, dinv2d, e0, n_layers, *, force_streamed=False,
                     bm=512, bk=1024, resident_vmem_budget=40 * (1 << 20)):
    """alpha * sum_{l=0..n_layers} (D^-1/2 A D^-1/2)^l @ e0, as f32 [N, D].

    adj_i8 : [Np, Np] int8 exact binary adjacency (padded), from build_lightgcn_graph.
    dinv2d : [Np, 1]  f32 d^{-1/2} vector (padded).
    e0     : [N, D]   f32 concatenated user/item embeddings.
    """
    N, D = e0.shape
    Np = adj_i8.shape[0]
    alpha = 1.0 / (n_layers + 1)
    if n_layers == 0:
        return e0.astype(jnp.float32)

    # Pad D to a multiple of 128: lane-dense MXU RHS and unmasked vector stores.
    Dp = _round_up(max(D, 128), 128)
    e0p = jnp.pad(e0, ((0, Np - N), (0, Dp - D))).astype(jnp.float32)

    # Resident path: adjacency stays in VMEM for all layers (n_layers x fewer adj HBM bytes).
    # Estimate: int8 adj + in-kernel bf16 copy + a few ego-sized f32 buffers.
    vmem_est = 3 * Np * Np + 12 * Np * Dp * 4
    if not force_streamed and vmem_est <= resident_vmem_budget:
        acc = _resident_forward(adj_i8, dinv2d, e0p, n_layers, alpha, vmem_est)
        return acc[:N, :D]

    # Streamed path: pick the largest power-of-two tiles (<= targets) that divide Np.
    def _pick(target):
        for cand in (target, 512, 256, 128):
            if cand <= Np and Np % cand == 0:
                return cand
        return 128
    bm = _pick(min(bm, Np))
    bk = _pick(min(bk, Np))

    ego = e0p.astype(jnp.bfloat16)     # inter-layer ego is only ever an MXU operand -> bf16
    acc = e0p                          # running layer-sum stays f32
    for _ in range(n_layers):
        ego, acc = _streamed_layer(adj_i8, dinv2d, ego, acc, bm=bm, bk=bk)
    return (acc * alpha)[:N, :D]


# ---------------------------------------------------------------------------
# Demo / self-test.
# ---------------------------------------------------------------------------

def xavier_uniform(key, shape):
    fan_in, fan_out = shape[0], shape[1]
    bound = float(np.sqrt(6.0 / (fan_in + fan_out)))
    return jax.random.uniform(key, shape, jnp.float32, -bound, bound)


if __name__ == "__main__":
    n_users, n_items = 48, 80          # N = 128
    embedding_dim = 64
    n_layers = 3
    N = n_users + n_items

    key = jax.random.PRNGKey(0)
    k_u, k_i, k_r = jax.random.split(key, 3)

    # Deterministic parameter init (matches nn.Embedding + xavier_uniform_ shapes).
    user_emb = xavier_uniform(k_u, (n_users, embedding_dim))
    item_emb = xavier_uniform(k_i, (n_items, embedding_dim))

    # Deterministic synthetic binary user-item interaction matrix.
    R = (jax.random.uniform(k_r, (n_users, n_items)) < 0.1).astype(jnp.float32)

    # Graph preprocessing (once, outside the forward hot path).
    adj_i8, dinv2d, _ = build_lightgcn_graph(R, n_users, n_items)

    # ego_embeddings = cat([user_emb, item_emb], dim=0)
    e0 = jnp.concatenate([user_emb, item_emb], axis=0)

    # Resident (adjacency-in-VMEM) path.
    all_emb = lightgcn_forward(adj_i8, dinv2d, e0, n_layers)
    # Streamed tiled path (exercised too, for coverage of the large-N fallback).
    all_emb_streamed = lightgcn_forward(adj_i8, dinv2d, e0, n_layers, force_streamed=True)

    user_all_embeddings = all_emb[:n_users, :]
    item_all_embeddings = all_emb[n_users:, :]
    jax.block_until_ready((user_all_embeddings, item_all_embeddings, all_emb_streamed))

    # Pure-JAX f32 reference of the forward semantics.
    A_f32 = adj_i8[:N, :N].astype(jnp.float32)
    dv = dinv2d[:N, 0]
    adj_norm = dv[:, None] * A_f32 * dv[None, :]
    ego = e0
    acc = e0
    for _ in range(n_layers):
        ego = adj_norm @ ego
        acc = acc + ego
    ref = acc / (n_layers + 1)

    np.testing.assert_allclose(np.asarray(all_emb), np.asarray(ref),
                               rtol=2e-2, atol=1e-2)
    np.testing.assert_allclose(np.asarray(all_emb_streamed), np.asarray(ref),
                               rtol=2e-2, atol=1e-2)

    print("KERNEL_OK")
</pallas_src>

<mosaic_0001>
module attributes {stable_mosaic.version = 11 : i64} {
  func.func @_resident_kernel(%arg0: memref<128x128xi8, #tpu.memory_space<vmem>>, %arg1: memref<128x1xf32, #tpu.memory_space<vmem>>, %arg2: memref<128x128xf32, #tpu.memory_space<vmem>>, %arg3: memref<128x128xf32, #tpu.memory_space<vmem>>) attributes {dimension_semantics = [], scalar_prefetch = 0 : i64, scratch_operands = 0 : i64, tpu.core_type = #tpu.core_type<tc>} {
    %c0 = arith.constant 0 : index
    %c0_0 = arith.constant 0 : index
    %0 = vector.load %arg0[%c0, %c0_0] : memref<128x128xi8, #tpu.memory_space<vmem>>, vector<128x128xi8>
    %1 = arith.sitofp %0 : vector<128x128xi8> to vector<128x128xbf16>
    %c0_1 = arith.constant 0 : index
    %c0_2 = arith.constant 0 : index
    %2 = vector.load %arg1[%c0_1, %c0_2] : memref<128x1xf32, #tpu.memory_space<vmem>>, vector<128x1xf32>
    %c0_3 = arith.constant 0 : index
    %c0_4 = arith.constant 0 : index
    %3 = vector.load %arg2[%c0_3, %c0_4] : memref<128x128xf32, #tpu.memory_space<vmem>>, vector<128x128xf32>
    %4 = vector.broadcast %2 : vector<128x1xf32> to vector<128x128xf32>
    %5 = arith.mulf %3, %4 : vector<128x128xf32>
    %6 = arith.truncf %5 : vector<128x128xf32> to vector<128x128xbf16>
    %cst = arith.constant dense<0.000000e+00> : vector<128x128xf32>
    %7 = tpu.matmul %1, %6, %cst {dimension_numbers = #tpu.dot_dimension_numbers<[1], [0], [0], [1], [0, 0, 1, 1], [], []>} : vector<128x128xbf16>, vector<128x128xbf16>, vector<128x128xf32> -> vector<128x128xf32>
    %8 = vector.broadcast %2 : vector<128x1xf32> to vector<128x128xf32>
    %9 = arith.mulf %7, %8 : vector<128x128xf32>
    %10 = arith.addf %3, %9 : vector<128x128xf32>
    %11 = vector.broadcast %2 : vector<128x1xf32> to vector<128x128xf32>
    %12 = arith.mulf %9, %11 : vector<128x128xf32>
    %13 = arith.truncf %12 : vector<128x128xf32> to vector<128x128xbf16>
    %cst_5 = arith.constant dense<0.000000e+00> : vector<128x128xf32>
    %14 = tpu.matmul %1, %13, %cst_5 {dimension_numbers = #tpu.dot_dimension_numbers<[1], [0], [0], [1], [0, 0, 1, 1], [], []>} : vector<128x128xbf16>, vector<128x128xbf16>, vector<128x128xf32> -> vector<128x128xf32>
    %15 = vector.broadcast %2 : vector<128x1xf32> to vector<128x128xf32>
    %16 = arith.mulf %14, %15 : vector<128x128xf32>
    %17 = arith.addf %10, %16 : vector<128x128xf32>
    %18 = vector.broadcast %2 : vector<128x1xf32> to vector<128x128xf32>
    %19 = arith.mulf %16, %18 : vector<128x128xf32>
    %20 = arith.truncf %19 : vector<128x128xf32> to vector<128x128xbf16>
    %cst_6 = arith.constant dense<0.000000e+00> : vector<128x128xf32>
    %21 = tpu.matmul %1, %20, %cst_6 {dimension_numbers = #tpu.dot_dimension_numbers<[1], [0], [0], [1], [0, 0, 1, 1], [], []>} : vector<128x128xbf16>, vector<128x128xbf16>, vector<128x128xf32> -> vector<128x128xf32>
    %22 = vector.broadcast %2 : vector<128x1xf32> to vector<128x128xf32>
    %23 = arith.mulf %21, %22 : vector<128x128xf32>
    %24 = arith.addf %17, %23 : vector<128x128xf32>
    %cst_7 = arith.constant 2.500000e-01 : f32
    %25 = vector.broadcast %cst_7 : f32 to vector<128x128xf32>
    %26 = arith.mulf %24, %25 : vector<128x128xf32>
    %c0_8 = arith.constant 0 : index
    %c0_9 = arith.constant 0 : index
    %27 = vector.load %arg3[%c0_8, %c0_9] : memref<128x128xf32, #tpu.memory_space<vmem>>, vector<128x128xf32>
    tpu.vector_store %arg3[%c0_8, %c0_9], %26 {strides = array<i32>} : memref<128x128xf32, #tpu.memory_space<vmem>>, vector<128x128xf32>,
    return
  }
}

</mosaic_0001>

<bundles_post_ra>
// kernel: tpu_custom_call.1
= control target key start
LH: loop header
LB: loop body
LE: loop exit
PB: predicated region body
PF: predicated region fallthrough
CT: control target
= control target key end

     0   :  { %8 = vsyncpa [#allocation3], 0  ;;  %s1376_s0 = inlined_call_operand.hbm [shape: s8[128,128], index: 0, kind: input, shape index: {}]   ;;  %s1377_s1 = inlined_call_operand.vmem [shape: f32[128,1], index: 1, kind: input, shape index: {}]   ;;  %s1378_s2 = inlined_call_operand.vmem [shape: f32[128,128], index: 2, kind: input, shape index: {}]   ;;  %s1379_s3 = inlined_call_operand.hbm [shape: f32[128,128], index: 3, kind: output, shape index: {}]  }
   0x1   :  { %9 = vsyncpa [#allocation4], 0  ;;  %s877_s12 = smov [#allocation2]   ;;  %s829_s16 = scalar_lea.hbm %s1376_s0, 512 }
   0x2   :  { %s15_s13 = sshll.u32 %s877_s12, 4  ;;  %p830_p0 = scmp.ne.s32.totalorder %s1376_s0, %s829_s16  ;;  %s16_s13 = int_to_ptr.vmem [resolvable:$true] %s15_s13 }
   0x3   :  { %p833_p1 = scmp.lt.u32.totalorder %s829_s16, %s1376_s0 }
   0x5   :  { %p835_p2 = pnand %p833_p1, %p830_p0 }
   0x7   :  { %838 = shalt.err (!%p835_p2)
}
   0x8   :  { %s839_s21 = scalar_lea.vmem %s16_s13, 512  ;;  %p844_p4 = scmp.lt.s32.totalorder %s16_s13, %s16_s13 }
   0x9   :  { %p840_p3 = scmp.ne.s32.totalorder %s16_s13, %s839_s21  ;;  %p845_p5 = scmp.lt.s32.totalorder %s839_s21, %s839_s21 }
   0xb   :  { %p846_p6 = por %p845_p5, %p844_p4 }
   0xd   :  { %p847_p7 = pnand %p846_p6, %p840_p3 }
   0xf   :  { %850 = shalt.err (!%p847_p7)
}
  0x10   :  { %s878_s22 = smov 128   ;;  %s879_s23 = smov 8  }
  0x11   :  { %21 = dma.hbm_to_vmem [thread:$0]  %s1376_s0, 512, %s16_s13, [#allocation3], %s878_s22, %s878_s22, %s879_s23  }
  0x12   :  { %873 = dma.done.wait [#allocation3], 512  }
  0x13   :  { %874 = vsyncadd [#allocation3], 4294966784  ;;  %v880_v0 = vmov 0   ;;  %v44_v1 = vld [vmem:[%s1377_s1 + $0x10] sm:$0xff]  ;;  %v42_v2 = vld [vmem:[%s1377_s1] sm:$0xff] }
  0x14   :  { %828 = vset.pattern.permute.xlu1 %v880_v0  ;;  %827 = vset.pattern.permute.xlu0 %v880_v0  ;;  %v45_v3 = vld [vmem:[%s1377_s1 + $0x18] sm:$0xff]  ;;  %v43_v4 = vld [vmem:[%s1377_s1 + $0x8] sm:$0xff]  ;;  %v46_v6 = vld [vmem:[%s1377_s1 + $0x20] sm:$0xff] }
  0x15   :  { %86 = vperm.xlu1 %828, %v44_v1   ;;  %76 = vperm.xlu0 %827, %v42_v2   ;;  %v47_v5 = vld [vmem:[%s1377_s1 + $0x28] sm:$0xff]  ;;  %v49_v7 = vld [vmem:[%s1377_s1 + $0x38] sm:$0xff]  ;;  %v48_v8 = vld [vmem:[%s1377_s1 + $0x30] sm:$0xff] }
  0x16   :  { %v51_v9 = vld [vmem:[%s1377_s1 + $0x48] sm:$0xff]  ;;  %v50_v10 = vld [vmem:[%s1377_s1 + $0x40] sm:$0xff]  ;;  %v53_v11 = vld [vmem:[%s1377_s1 + $0x58] sm:$0xff] }
  0x17   :  { %v52_v12 = vld [vmem:[%s1377_s1 + $0x50] sm:$0xff]  ;;  %v55_v13 = vld [vmem:[%s1377_s1 + $0x68] sm:$0xff]  ;;  %v54_v14 = vld [vmem:[%s1377_s1 + $0x60] sm:$0xff] }
  0x18   :  { %v57_v15 = vld [vmem:[%s1377_s1 + $0x78] sm:$0xff]  ;;  %v56_v16 = vld [vmem:[%s1377_s1 + $0x70] sm:$0xff]  ;;  %v965_v17 = vld [vmem:[#allocation2] sm:$0xff] }
  0x19   :  { %91 = vperm.xlu1 %828, %v45_v3   ;;  %81 = vperm.xlu0 %827, %v43_v4   ;;  %v968_v18 = vunpack.c.l.s8.bf16 %v965_v17  ;;  %v979_v21 = vld [vmem:[%s1378_s2] sm:$0xff]  ;;  %v984_v22 = vld [vmem:[%s1378_s2 + $0x8] sm:$0xff]  ;;  %v989_v23 = vld [vmem:[%s1378_s2 + $0x10] sm:$0xff] }
  0x1a   :  { %v994_v24 = vld [vmem:[%s1378_s2 + $0x18] sm:$0xff]  ;;  %v1011_v31 = vld [vmem:[%s1378_s2 + $0x20] sm:$0xff]  ;;  %v1016_v32 = vld [vmem:[%s1378_s2 + $0x28] sm:$0xff] }
  0x1b   :  { %726 = vmatprep.mubr.bf16.mxu0 %v968_v18  ;;  %758 = vmatprep.mubr.bf16.mxu1 %v968_v18  ;;  %v1029_v39 = vld [vmem:[%s1378_s2 + $0x30] sm:$0xff]  ;;  %v1034_v40 = vld [vmem:[%s1378_s2 + $0x38] sm:$0xff]  ;;  %v1047_v46 = vld [vmem:[%s1378_s2 + $0x40] sm:$0xff] }
  0x1c   :  { %v1052_v47 = vld [vmem:[%s1378_s2 + $0x48] sm:$0xff]  ;;  %v1065_v53 = vld [vmem:[%s1378_s2 + $0x50] sm:$0xff]  ;;  %v1070_v54 = vld [vmem:[%s1378_s2 + $0x58] sm:$0xff] }
  0x1d   :  { %101 = vperm.xlu1 %828, %v47_v5   ;;  %96 = vperm.xlu0 %827, %v46_v6   ;;  %v1083_v60 = vld [vmem:[%s1378_s2 + $0x60] sm:$0xff]  ;;  %v1088_v61 = vld [vmem:[%s1378_s2 + $0x68] sm:$0xff]  ;;  %v1101_v3 = vld [vmem:[%s1378_s2 + $0x70] sm:$0xff] }
  0x1e   :  { %1382 = vst [vmem:[#allocation8_spill] sm:$0xff] %v1088_v61  ;;  %v1106_v4 = vld [vmem:[%s1378_s2 + $0x78] sm:$0xff]  ;;  %s881_s2 = smov [#allocation5]  }
  0x1f   :  { %1383 = vst [vmem:[#allocation9_spill] sm:$0xff] %v1106_v4  ;;  %s650_s8 = sshll.u32 %s881_s2, 4  ;;  %s651_s8 = int_to_ptr.vmem [resolvable:$true] %s650_s8 }
  0x20   :  { %s851_s9 = scalar_lea.vmem %s651_s8, 2048  ;;  %p856_p9 = scmp.lt.s32.totalorder %s651_s8, %s651_s8 }
  0x21   :  { %111 = vperm.xlu1 %828, %v49_v7   ;;  %106 = vperm.xlu0 %827, %v48_v8   ;;  %p852_p8 = scmp.ne.s32.totalorder %s651_s8, %s851_s9  ;;  %p857_p10 = scmp.lt.s32.totalorder %s851_s9, %s851_s9 }
  0x23   :  { %p858_p11 = por %p857_p10, %p856_p9 }
  0x25   :  { %121 = vperm.xlu1 %828, %v51_v9   ;;  %116 = vperm.xlu0 %827, %v50_v10   ;;  %p859_p12 = pnand %p858_p11, %p852_p8 }
  0x29   :  { %131 = vperm.xlu1 %828, %v53_v11   ;;  %126 = vperm.xlu0 %827, %v52_v12   ;;  %v31_v11 = vld [vmem:[#allocation2 + $0x8] sm:$0xff]  ;;  %v1117_v12 = vunpack.c.h.s8.bf16 %v965_v17 }
  0x2d   :  { %141 = vperm.xlu1 %828, %v55_v13   ;;  %136 = vperm.xlu0 %827, %v54_v14   ;;  %v1119_v13 = vunpack.c.l.s8.bf16 %v31_v11  ;;  %v32_v14 = vld [vmem:[#allocation2 + $0x10] sm:$0xff] }
  0x31   :  { %151 = vperm.xlu1 %828, %v57_v15   ;;  %146 = vperm.xlu0 %827, %v56_v16   ;;  %v1123_v15 = vunpack.c.h.s8.bf16 %v31_v11  ;;  %v1125_v16 = vunpack.c.l.s8.bf16 %v32_v14 }
  0x94   :  { %v972_v19 = vpop.permute.xlu1 %86  ;;  %v974_v20 = vpop.permute.xlu0 %76 }
  0x95   :  { %v154_v27 = vmul.f32 %v974_v20, %v979_v21  ;;  %v156_v29 = vmul.f32 %v972_v19, %v989_v23 }
  0x98   :  { %v996_v25 = vpop.permute.xlu1 %91  ;;  %v998_v26 = vpop.permute.xlu0 %81 }
  0x99   :  { %v155_v28 = vmul.f32 %v998_v26, %v984_v22  ;;  %v157_v30 = vmul.f32 %v996_v25, %v994_v24 }
  0x9b   :  { %v170_v33 = vpack.c.bf16 %v155_v28, %v154_v27  ;;  %v171_v36 = vpack.c.bf16 %v157_v30, %v156_v29  ;;  %v33_v27 = vld [vmem:[#allocation2 + $0x18] sm:$0xff]  ;;  %v1129_v28 = vunpack.c.h.s8.bf16 %v32_v14 }
  0x9c   :  { %v1018_v34 = vpop.permute.xlu1 %101  ;;  %v1020_v35 = vpop.permute.xlu0 %96  ;;  %v1131_v17 = vunpack.c.l.s8.bf16 %v33_v27  ;;  %v1135_v29 = vunpack.c.h.s8.bf16 %v33_v27 }
  0x9d   :  { %710 = vmatprep.subr.bf16.mxu0 %v170_v33  ;;  %v158_v37 = vmul.f32 %v1020_v35, %v1011_v31  ;;  %v159_v38 = vmul.f32 %v1018_v34, %v1016_v32 }
  0x9e   :  { %711 = vmatpush3.bf16.msra.mxu0 %v170_v33 }
  0x9f   :  { %712 = vmatprep.subr.bf16.mxu0 %v171_v36  ;;  %v172_v43 = vpack.c.bf16 %v159_v38, %v158_v37 }
  0xa0   :  { %v1036_v41 = vpop.permute.xlu1 %111  ;;  %v1038_v42 = vpop.permute.xlu0 %106 }
  0xa1   :  { %v160_v44 = vmul.f32 %v1038_v42, %v1029_v39  ;;  %v161_v45 = vmul.f32 %v1036_v41, %v1034_v40 }
  0xa2   :  { %713 = vmatpush3.bf16.msra.mxu0 %v171_v36 }
  0xa3   :  { %714 = vmatprep.subr.bf16.mxu0 %v172_v43  ;;  %v173_v50 = vpack.c.bf16 %v161_v45, %v160_v44 }
  0xa4   :  { %v1054_v48 = vpop.permute.xlu1 %121  ;;  %v1056_v49 = vpop.permute.xlu0 %116 }
  0xa5   :  { %v162_v51 = vmul.f32 %v1056_v49, %v1047_v46  ;;  %v163_v52 = vmul.f32 %v1054_v48, %v1052_v47 }
  0xa6   :  { %715 = vmatpush3.bf16.msra.mxu0 %v172_v43 }
  0xa7   :  { %716 = vmatprep.subr.bf16.mxu0 %v173_v50  ;;  %v174_v57 = vpack.c.bf16 %v163_v52, %v162_v51 }
  0xa8   :  { %v1072_v55 = vpop.permute.xlu1 %131  ;;  %v1074_v56 = vpop.permute.xlu0 %126 }
  0xa9   :  { %v164_v58 = vmul.f32 %v1074_v56, %v1065_v53  ;;  %v165_v59 = vmul.f32 %v1072_v55, %v1070_v54 }
  0xaa   :  { %717 = vmatpush3.bf16.msra.mxu0 %v173_v50 }
  0xab   :  { %718 = vmatprep.subr.bf16.mxu0 %v174_v57  ;;  %v175_v0 = vpack.c.bf16 %v165_v59, %v164_v58 }
  0xac   :  { %v1090_v62 = vpop.permute.xlu1 %141  ;;  %v1092_v63 = vpop.permute.xlu0 %136 }
  0xad   :  { %v166_v1 = vmul.f32 %v1092_v63, %v1083_v60  ;;  %v167_v2 = vmul.f32 %v1090_v62, %v1088_v61 }
  0xae   :  { %719 = vmatpush3.bf16.msra.mxu0 %v174_v57 }
  0xaf   :  { %720 = vmatprep.subr.bf16.mxu0 %v175_v0  ;;  %v176_v7 = vpack.c.bf16 %v167_v2, %v166_v1 }
  0xb0   :  { %v1108_v5 = vpop.permute.xlu1 %151  ;;  %v1110_v6 = vpop.permute.xlu0 %146 }
  0xb1   :  { %v168_v8 = vmul.f32 %v1110_v6, %v1101_v3  ;;  %v169_v9 = vmul.f32 %v1108_v5, %v1106_v4 }
  0xb2   :  { %721 = vmatpush3.bf16.msra.mxu0 %v175_v0 }
  0xb3   :  { %722 = vmatprep.subr.bf16.mxu0 %v176_v7  ;;  %v177_v10 = vpack.c.bf16 %v169_v9, %v168_v8 }
  0xb6   :  { %723 = vmatpush3.bf16.msra.mxu0 %v176_v7 }
  0xb7   :  { %724 = vmatprep.subr.bf16.mxu0 %v177_v10 }
  0xba   :  { %725 = vmatpush3.bf16.msra.mxu0 %v177_v10 }
  0xbd   :  { %727 = vmatmul.mubr.bf16.vlgmr.msra.gmra.mrb[0].mxu0 %v1117_v12 }
  0xbe   :  { %730 = vmatprep.mubr.bf16.mxu0 %v1119_v13 }
  0xc5   :  { %731 = vmatmul.mubr.bf16.gmra.mrb[4].mxu0 %v1123_v15 }
  0xc6   :  { %734 = vmatprep.mubr.bf16.mxu0 %v1125_v16 }
  0xcd   :  { %735 = vmatmul.mubr.bf16.gmra.mrb[8].mxu0 %v1129_v28 }
  0xce   :  { %738 = vmatprep.mubr.bf16.mxu0 %v1131_v17 }
  0xd5   :  { %739 = vmatmul.mubr.bf16.gmra.mrb[12].mxu0 %v1135_v29 }
  0xd6   :  { %790 = vmatprep.mubr.bf16.mxu0 %v968_v18 }
 0x190   :  { %v728_v30 = vpop.f32.mrb[0].mxu0 }
 0x191   :  { %v1140_v33 = vmul.f32 %v728_v30, %v972_v19  ;;  %v212_v36 = vpop.f32.mrb[1].mxu0 }
 0x192   :  { %v1143_v37 = vmul.f32 %v212_v36, %v974_v20  ;;  %v729_v38 = vpop.f32.mrb[2].mxu0 }
 0x193   :  { %v1146_v43 = vmul.f32 %v729_v38, %v996_v25  ;;  %v215_v44 = vpop.f32.mrb[3].mxu0  ;;  %v309_v50 = vmul.f32 %v1140_v33, %v972_v19 }
 0x194   :  { %v1149_v45 = vmul.f32 %v215_v44, %v998_v26  ;;  %v307_v51 = vmul.f32 %v1143_v37, %v974_v20 }
 0x195   :  { %v310_v18 = vmul.f32 %v1146_v43, %v996_v25 }
 0x196   :  { %v308_v52 = vmul.f32 %v1149_v45, %v998_v26 }
 0x197   :  { %v324_v57 = vpack.c.bf16 %v310_v18, %v309_v50 }
 0x198   :  { %v732_v58 = vpop.f32.mrb[4].mxu0  ;;  %v323_v59 = vpack.c.bf16 %v308_v52, %v307_v51 }
 0x199   :  { %v1160_v0 = vmul.f32 %v732_v58, %v1038_v42  ;;  %v228_v1 = vpop.f32.mrb[5].mxu0 }
 0x19a   :  { %v1163_v2 = vmul.f32 %v228_v1, %v1020_v35  ;;  %v733_v7 = vpop.f32.mrb[6].mxu0  ;;  %742 = vmatprep.subr.bf16.mxu1 %v323_v59 }
 0x19b   :  { %v1166_v8 = vmul.f32 %v733_v7, %v1036_v41  ;;  %v231_v9 = vpop.f32.mrb[7].mxu0  ;;  %743 = vmatpush3.bf16.msra.mxu1 %v323_v59  ;;  %v313_v11 = vmul.f32 %v1160_v0, %v1038_v42 }
 0x19c   :  { %v1169_v10 = vmul.f32 %v231_v9, %v1018_v34  ;;  %744 = vmatprep.subr.bf16.mxu1 %v324_v57  ;;  %v311_v27 = vmul.f32 %v1163_v2, %v1020_v35 }
 0x19d   :  { %v314_v14 = vmul.f32 %v1166_v8, %v1036_v41 }
 0x19e   :  { %v312_v30 = vmul.f32 %v1169_v10, %v1018_v34 }
 0x19f   :  { %745 = vmatpush3.bf16.msra.mxu1 %v324_v57  ;;  %v326_v36 = vpack.c.bf16 %v314_v14, %v313_v11 }
 0x1a0   :  { %v736_v38 = vpop.f32.mrb[8].mxu0  ;;  %v325_v44 = vpack.c.bf16 %v312_v30, %v311_v27 }
 0x1a1   :  { %v1180_v50 = vmul.f32 %v736_v38, %v1074_v56  ;;  %v244_v18 = vpop.f32.mrb[9].mxu0 }
 0x1a2   :  { %v1183_v51 = vmul.f32 %v244_v18, %v1056_v49  ;;  %v737_v52 = vpop.f32.mrb[10].mxu0  ;;  %746 = vmatprep.subr.bf16.mxu1 %v325_v44 }
 0x1a3   :  { %v1186_v58 = vmul.f32 %v737_v52, %v1072_v55  ;;  %v247_v59 = vpop.f32.mrb[11].mxu0  ;;  %747 = vmatpush3.bf16.msra.mxu1 %v325_v44  ;;  %v317_v57 = vmul.f32 %v1180_v50, %v1074_v56 }
 0x1a4   :  { %v1189_v1 = vmul.f32 %v247_v59, %v1054_v48  ;;  %748 = vmatprep.subr.bf16.mxu1 %v326_v36  ;;  %v315_v9 = vmul.f32 %v1183_v51, %v1056_v49 }
 0x1a5   :  { %v318_v7 = vmul.f32 %v1186_v58, %v1072_v55 }
 0x1a6   :  { %v316_v11 = vmul.f32 %v1189_v1, %v1054_v48 }
 0x1a7   :  { %749 = vmatpush3.bf16.msra.mxu1 %v326_v36  ;;  %v328_v14 = vpack.c.bf16 %v318_v7, %v317_v57 }
 0x1a8   :  { %v740_v27 = vpop.f32.mrb[12].mxu0  ;;  %v327_v30 = vpack.c.bf16 %v316_v11, %v315_v9 }
 0x1a9   :  { %v1200_v38 = vmul.f32 %v740_v27, %v1110_v6  ;;  %v260_v44 = vpop.f32.mrb[13].mxu0 }
 0x1aa   :  { %v1203_v18 = vmul.f32 %v260_v44, %v1092_v63  ;;  %v741_v52 = vpop.f32.mrb[14].mxu0  ;;  %750 = vmatprep.subr.bf16.mxu1 %v327_v30 }
 0x1ab   :  { %v1206_v59 = vmul.f32 %v741_v52, %v1108_v5  ;;  %v263_v61 = vpop.f32.mrb[15].mxu0  ;;  %751 = vmatpush3.bf16.msra.mxu1 %v327_v30  ;;  %v321_v36 = vmul.f32 %v1200_v38, %v1110_v6  ;;  %v291_v52 = vadd.f32 %v1143_v37, %v979_v21 }
 0x1ac   :  { %v1209_v4 = vmul.f32 %v263_v61, %v1090_v62  ;;  %752 = vmatprep.subr.bf16.mxu1 %v328_v14  ;;  %v319_v7 = vmul.f32 %v1203_v18, %v1092_v63 }
 0x1ad   :  { %v322_v57 = vmul.f32 %v1206_v59, %v1108_v5 }
 0x1ae   :  { %v320_v9 = vmul.f32 %v1209_v4, %v1090_v62 }
 0x1af   :  { %753 = vmatpush3.bf16.msra.mxu1 %v328_v14  ;;  %v330_v11 = vpack.c.bf16 %v322_v57, %v321_v36  ;;  %v293_v14 = vadd.f32 %v1140_v33, %v989_v23  ;;  %v292_v23 = vadd.f32 %v1149_v45, %v984_v22  ;;  %v297_v22 = vadd.f32 %v1160_v0, %v1029_v39 }
 0x1b0   :  { %v329_v27 = vpack.c.bf16 %v320_v9, %v319_v7  ;;  %v294_v7 = vadd.f32 %v1146_v43, %v994_v24  ;;  %v296_v39 = vadd.f32 %v1169_v10, %v1016_v32 }
 0x1b2   :  { %754 = vmatprep.subr.bf16.mxu1 %v329_v27 }
 0x1b3   :  { %755 = vmatpush3.bf16.msra.mxu1 %v329_v27 }
 0x1b4   :  { %756 = vmatprep.subr.bf16.mxu1 %v330_v11 }
 0x1b7   :  { %757 = vmatpush3.bf16.msra.mxu1 %v330_v11 }
 0x1ba   :  { %759 = vmatmul.mubr.bf16.vlgmr.msra.gmra.mrb[0].mxu1 %v1117_v12 }
 0x1bb   :  { %762 = vmatprep.mubr.bf16.mxu1 %v1119_v13 }
 0x1c2   :  { %763 = vmatmul.mubr.bf16.gmra.mrb[4].mxu1 %v1123_v15 }
 0x1c3   :  { %766 = vmatprep.mubr.bf16.mxu1 %v1125_v16 }
 0x1ca   :  { %767 = vmatmul.mubr.bf16.gmra.mrb[8].mxu1 %v1129_v28 }
 0x1cb   :  { %770 = vmatprep.mubr.bf16.mxu1 %v1131_v17 }
 0x1d2   :  { %771 = vmatmul.mubr.bf16.gmra.mrb[12].mxu1 %v1135_v29 }
 0x1d3   :  { %798 = vmatprep.mubr.bf16.mxu1 %v1125_v16 }
 0x28d   :  { %v760_v61 = vpop.f32.mrb[0].mxu1 }
 0x28e   :  { %v430_v30 = vmul.f32 %v760_v61, %v972_v19  ;;  %v365_v44 = vpop.f32.mrb[1].mxu1 }
 0x28f   :  { %v428_v36 = vmul.f32 %v365_v44, %v974_v20  ;;  %v761_v57 = vpop.f32.mrb[2].mxu1 }
 0x290   :  { %v1235_v9 = vadd.f32 %v430_v30, %v293_v14  ;;  %v431_v16 = vmul.f32 %v761_v57, %v996_v25  ;;  %v368_v11 = vpop.f32.mrb[3].mxu1  ;;  %v462_v21 = vmul.f32 %v430_v30, %v972_v19  ;;  %v295_v30 = vadd.f32 %v1163_v2, %v1011_v31 }
 0x291   :  { %v1240_v33 = vadd.f32 %v428_v36, %v291_v52  ;;  %v429_v27 = vmul.f32 %v368_v11, %v998_v26  ;;  %v460_v24 = vmul.f32 %v428_v36, %v974_v20  ;;  %v298_v36 = vadd.f32 %v1166_v8, %v1034_v40 }
 0x292   :  { %1384 = vst [vmem:[#allocation10_spill] sm:$0xff] %v1235_v9  ;;  %v1244_v37 = vadd.f32 %v431_v16, %v294_v7  ;;  %v463_v61 = vmul.f32 %v431_v16, %v996_v25 }
 0x293   :  { %v1248_v43 = vadd.f32 %v429_v27, %v292_v23  ;;  %v461_v14 = vmul.f32 %v429_v27, %v998_v26 }
 0x294   :  { %v477_v44 = vpack.c.bf16 %v463_v61, %v462_v21 }
 0x295   :  { %v476_v57 = vpack.c.bf16 %v461_v14, %v460_v24  ;;  %v764_v9 = vpop.f32.mrb[4].mxu1  ;;  %v301_v14 = vadd.f32 %v1180_v50, %v1065_v53  ;;  %v300_v53 = vadd.f32 %v1189_v1, %v1052_v47 }
 0x296   :  { %v434_v45 = vmul.f32 %v764_v9, %v1038_v42  ;;  %v381_v52 = vpop.f32.mrb[5].mxu1 }
 0x297   :  { %v432_v7 = vmul.f32 %v381_v52, %v1020_v35  ;;  %v765_v16 = vpop.f32.mrb[6].mxu1  ;;  %774 = vmatprep.subr.bf16.mxu0 %v476_v57  ;;  %806 = vmatprep.subr.bf16.mxu1 %v476_v57 }
 0x298   :  { %v1259_v11 = vadd.f32 %v434_v45, %v297_v22  ;;  %v435_v23 = vmul.f32 %v765_v16, %v1036_v41  ;;  %v384_v27 = vpop.f32.mrb[7].mxu1  ;;  %775 = vmatpush3.bf16.msra.mxu0 %v476_v57  ;;  %814 = vmatpush3.bf16.msra.mxu1 %v476_v57  ;;  %v466_v2 = vmul.f32 %v434_v45, %v1038_v42 }
 0x299   :  { %v1264_v0 = vadd.f32 %v432_v7, %v295_v30  ;;  %v433_v31 = vmul.f32 %v384_v27, %v1018_v34  ;;  %776 = vmatprep.subr.bf16.mxu0 %v477_v44  ;;  %807 = vmatprep.subr.bf16.mxu1 %v477_v44  ;;  %v464_v8 = vmul.f32 %v432_v7, %v1020_v35 }
 0x29a   :  { %v1268_v9 = vadd.f32 %v435_v23, %v298_v36  ;;  %v467_v40 = vmul.f32 %v435_v23, %v1036_v41  ;;  %v299_v45 = vadd.f32 %v1183_v51, %v1047_v46  ;;  %v302_v7 = vadd.f32 %v1186_v58, %v1070_v54 }
 0x29b   :  { %v1272_v21 = vadd.f32 %v433_v31, %v296_v39  ;;  %v465_v61 = vmul.f32 %v433_v31, %v1018_v34 }
 0x29c   :  { %v479_v24 = vpack.c.bf16 %v467_v40, %v466_v2  ;;  %777 = vmatpush3.bf16.msra.mxu0 %v477_v44  ;;  %815 = vmatpush3.bf16.msra.mxu1 %v477_v44  ;;  %v305_v2 = vadd.f32 %v1200_v38, %v1101_v3  ;;  %v1386_v3 = vld [vmem:[#allocation8_spill] sm:$0xff] }
 0x29d   :  { %v478_v32 = vpack.c.bf16 %v465_v61, %v464_v8  ;;  %v768_v10 = vpop.f32.mrb[8].mxu1  ;;  %v303_v61 = vadd.f32 %v1203_v18, %v1083_v60  ;;  %v304_v38 = vadd.f32 %v1209_v4, %v1386_v3 }
 0x29e   :  { %v438_v57 = vmul.f32 %v768_v10, %v1074_v56  ;;  %v397_v22 = vpop.f32.mrb[9].mxu1 }
 0x29f   :  { %v436_v52 = vmul.f32 %v397_v22, %v1056_v49  ;;  %v769_v30 = vpop.f32.mrb[10].mxu1  ;;  %778 = vmatprep.subr.bf16.mxu0 %v478_v32  ;;  %808 = vmatprep.subr.bf16.mxu1 %v478_v32 }
 0x2a0   :  { %v1283_v44 = vadd.f32 %v438_v57, %v301_v14  ;;  %v439_v16 = vmul.f32 %v769_v30, %v1072_v55  ;;  %v400_v36 = vpop.f32.mrb[11].mxu1  ;;  %779 = vmatpush3.bf16.msra.mxu0 %v478_v32  ;;  %816 = vmatpush3.bf16.msra.mxu1 %v478_v32  ;;  %v470_v51 = vmul.f32 %v438_v57, %v1074_v56  ;;  %v1385_v14 = vld [vmem:[#allocation9_spill] sm:$0xff] }
 0x2a1   :  { %v1288_v50 = vadd.f32 %v436_v52, %v299_v45  ;;  %v437_v46 = vmul.f32 %v400_v36, %v1054_v48  ;;  %780 = vmatprep.subr.bf16.mxu0 %v479_v24  ;;  %809 = vmatprep.subr.bf16.mxu1 %v479_v24  ;;  %v468_v58 = vmul.f32 %v436_v52, %v1056_v49 }
 0x2a2   :  { %v1292_v23 = vadd.f32 %v439_v16, %v302_v7  ;;  %v471_v54 = vmul.f32 %v439_v16, %v1072_v55  ;;  %v306_v57 = vadd.f32 %v1206_v59, %v1385_v14 }
 0x2a3   :  { %v1296_v27 = vadd.f32 %v437_v46, %v300_v53  ;;  %v469_v39 = vmul.f32 %v437_v46, %v1054_v48 }
 0x2a4   :  { %v481_v31 = vpack.c.bf16 %v471_v54, %v470_v51  ;;  %781 = vmatpush3.bf16.msra.mxu0 %v479_v24  ;;  %817 = vmatpush3.bf16.msra.mxu1 %v479_v24 }
 0x2a5   :  { %v480_v47 = vpack.c.bf16 %v469_v39, %v468_v58  ;;  %v772_v1 = vpop.f32.mrb[12].mxu1 }
 0x2a6   :  { %v442_v40 = vmul.f32 %v772_v1, %v1110_v6  ;;  %v413_v8 = vpop.f32.mrb[13].mxu1  ;;  %v1387_v1 = vld [vmem:[#allocation10_spill] sm:$0xff] }
 0x2a7   :  { %v440_v32 = vmul.f32 %v413_v8, %v1092_v63  ;;  %v773_v10 = vpop.f32.mrb[14].mxu1  ;;  %782 = vmatprep.subr.bf16.mxu0 %v480_v47  ;;  %810 = vmatprep.subr.bf16.mxu1 %v480_v47 }
 0x2a8   :  { %v1307_v24 = vadd.f32 %v442_v40, %v305_v2  ;;  %v443_v22 = vmul.f32 %v773_v10, %v1108_v5  ;;  %v416_v45 = vpop.f32.mrb[15].mxu1  ;;  %783 = vmatpush3.bf16.msra.mxu0 %v480_v47  ;;  %818 = vmatpush3.bf16.msra.mxu1 %v480_v47  ;;  %v474_v18 = vmul.f32 %v442_v40, %v1110_v6 }
 0x2a9   :  { %v1312_v52 = vadd.f32 %v440_v32, %v303_v61  ;;  %v441_v60 = vmul.f32 %v416_v45, %v1090_v62  ;;  %784 = vmatprep.subr.bf16.mxu0 %v481_v31  ;;  %811 = vmatprep.subr.bf16.mxu1 %v481_v31  ;;  %v472_v7 = vmul.f32 %v440_v32, %v1092_v63 }
 0x2aa   :  { %v1316_v30 = vadd.f32 %v443_v22, %v306_v57  ;;  %v475_v59 = vmul.f32 %v443_v22, %v1108_v5 }
 0x2ab   :  { %v1320_v16 = vadd.f32 %v441_v60, %v304_v38  ;;  %v473_v36 = vmul.f32 %v441_v60, %v1090_v62 }
 0x2ac   :  { %v483_v53 = vpack.c.bf16 %v475_v59, %v474_v18  ;;  %785 = vmatpush3.bf16.msra.mxu0 %v481_v31  ;;  %819 = vmatpush3.bf16.msra.mxu1 %v481_v31 }
 0x2ad   :  { %v482_v4 = vpack.c.bf16 %v473_v36, %v472_v7 }
 0x2af   :  { %786 = vmatprep.subr.bf16.mxu0 %v482_v4  ;;  %812 = vmatprep.subr.bf16.mxu1 %v482_v4 }
 0x2b0   :  { %787 = vmatpush3.bf16.msra.mxu0 %v482_v4  ;;  %820 = vmatpush3.bf16.msra.mxu1 %v482_v4 }
 0x2b1   :  { %788 = vmatprep.subr.bf16.mxu0 %v483_v53  ;;  %813 = vmatprep.subr.bf16.mxu1 %v483_v53 }
 0x2b4   :  { %789 = vmatpush3.bf16.msra.mxu0 %v483_v53  ;;  %821 = vmatpush3.bf16.msra.mxu1 %v483_v53 }
 0x2b7   :  { %791 = vmatmul.mubr.bf16.vlgmr.msra.gmra.mrb[16].mxu0 %v1117_v12  ;;  %799 = vmatmul.mubr.bf16.vlgmr.msra.gmra.mrb[16].mxu1 %v1129_v28 }
 0x2b8   :  { %794 = vmatprep.mubr.bf16.mxu0 %v1119_v13  ;;  %802 = vmatprep.mubr.bf16.mxu1 %v1131_v17 }
 0x2bf   :  { %795 = vmatmul.mubr.bf16.gmra.mrb[20].mxu0 %v1123_v15  ;;  %803 = vmatmul.mubr.bf16.gmra.mrb[20].mxu1 %v1135_v29 }
 0x38a   :  { %v792_v46 = vpop.f32.mrb[16].mxu0  ;;  %v800_v51 = vpop.f32.mrb[16].mxu1 }
 0x38b   :  { %v583_v54 = vmul.f32 %v792_v46, %v972_v19  ;;  %v591_v58 = vmul.f32 %v800_v51, %v1074_v56  ;;  %v518_v39 = vpop.f32.mrb[17].mxu0  ;;  %v550_v31 = vpop.f32.mrb[17].mxu1 }
 0x38c   :  { %v581_v12 = vmul.f32 %v518_v39, %v974_v20  ;;  %v589_v28 = vmul.f32 %v550_v31, %v1056_v49  ;;  %v793_v47 = vpop.f32.mrb[18].mxu0  ;;  %v801_v13 = vpop.f32.mrb[18].mxu1 }
 0x38d   :  { %v599_v17 = vadd.f32 %v583_v54, %v1387_v1  ;;  %v607_v15 = vadd.f32 %v591_v58, %v1283_v44  ;;  %v584_v29 = vmul.f32 %v793_v47, %v996_v25  ;;  %v592_v2 = vmul.f32 %v801_v13, %v1072_v55  ;;  %v521_v40 = vpop.f32.mrb[19].mxu0  ;;  %v553_v19 = vpop.f32.mrb[19].mxu1 }
 0x38e   :  { %v597_v56 = vadd.f32 %v581_v12, %v1240_v33  ;;  %v605_v8 = vadd.f32 %v589_v28, %v1288_v50  ;;  %v582_v20 = vmul.f32 %v521_v40, %v998_v26  ;;  %v590_v49 = vmul.f32 %v553_v19, %v1054_v48 }
 0x38f   :  { %v615_v61 = vmul.f32 0.25, %v599_v17  ;;  %v623_v32 = vmul.f32 0.25, %v607_v15  ;;  %v600_v10 = vadd.f32 %v584_v29, %v1244_v37  ;;  %v608_v44 = vadd.f32 %v592_v2, %v1292_v23 }
 0x390   :  { %v613_v14 = vmul.f32 0.25, %v597_v56  ;;  %v621_v25 = vmul.f32 0.25, %v605_v8  ;;  %v598_v55 = vadd.f32 %v582_v20, %v1248_v43  ;;  %v606_v57 = vadd.f32 %v590_v49, %v1296_v27 }
 0x391   :  { %631 = vst [vmem:[#allocation5 + $0x10] sm:$0xff] %v615_v61  ;;  %639 = vst [vmem:[#allocation5 + $0x50] sm:$0xff] %v623_v32  ;;  %v616_v33 = vmul.f32 0.25, %v600_v10  ;;  %v624_v50 = vmul.f32 0.25, %v608_v44 }
 0x392   :  { %629 = vst [vmem:[#allocation5] sm:$0xff] %v613_v14  ;;  %637 = vst [vmem:[#allocation5 + $0x40] sm:$0xff] %v621_v25  ;;  %v614_v26 = vmul.f32 0.25, %v598_v55  ;;  %v622_v48 = vmul.f32 0.25, %v606_v57  ;;  %v796_v22 = vpop.f32.mrb[20].mxu0  ;;  %v804_v45 = vpop.f32.mrb[20].mxu1 }
 0x393   :  { %632 = vst [vmem:[#allocation5 + $0x18] sm:$0xff] %v616_v33  ;;  %640 = vst [vmem:[#allocation5 + $0x58] sm:$0xff] %v624_v50  ;;  %v587_v37 = vmul.f32 %v796_v22, %v1038_v42  ;;  %v595_v23 = vmul.f32 %v804_v45, %v1110_v6  ;;  %v534_v3 = vpop.f32.mrb[21].mxu0  ;;  %v566_v43 = vpop.f32.mrb[21].mxu1 }
 0x394   :  { %630 = vst [vmem:[#allocation5 + $0x8] sm:$0xff] %v614_v26  ;;  %638 = vst [vmem:[#allocation5 + $0x48] sm:$0xff] %v622_v48  ;;  %v585_v27 = vmul.f32 %v534_v3, %v1020_v35  ;;  %v593_v38 = vmul.f32 %v566_v43, %v1092_v63  ;;  %v797_v60 = vpop.f32.mrb[22].mxu0  ;;  %v805_v18 = vpop.f32.mrb[22].mxu1 }
 0x395   :  { %v603_v59 = vadd.f32 %v587_v37, %v1259_v11  ;;  %v611_v7 = vadd.f32 %v595_v23, %v1307_v24  ;;  %v588_v36 = vmul.f32 %v797_v60, %v1036_v41  ;;  %v596_v42 = vmul.f32 %v805_v18, %v1108_v5  ;;  %v537_v53 = vpop.f32.mrb[23].mxu0  ;;  %v569_v6 = vpop.f32.mrb[23].mxu1 }
 0x396   :  { %v601_v4 = vadd.f32 %v585_v27, %v1264_v0  ;;  %v609_v46 = vadd.f32 %v593_v38, %v1312_v52  ;;  %v586_v35 = vmul.f32 %v537_v53, %v1018_v34  ;;  %v594_v63 = vmul.f32 %v569_v6, %v1090_v62 }
 0x397   :  { %v619_v51 = vmul.f32 0.25, %v603_v59  ;;  %v627_v54 = vmul.f32 0.25, %v611_v7  ;;  %v604_v11 = vadd.f32 %v588_v36, %v1268_v9  ;;  %v612_v24 = vadd.f32 %v596_v42, %v1316_v30 }
 0x398   :  { %v617_v41 = vmul.f32 0.25, %v601_v4  ;;  %v625_v5 = vmul.f32 0.25, %v609_v46  ;;  %v602_v58 = vadd.f32 %v586_v35, %v1272_v21  ;;  %v610_v0 = vadd.f32 %v594_v63, %v1320_v16 }
 0x399   :  { %635 = vst [vmem:[#allocation5 + $0x30] sm:$0xff] %v619_v51  ;;  %643 = vst [vmem:[#allocation5 + $0x70] sm:$0xff] %v627_v54  ;;  %v620_v52 = vmul.f32 0.25, %v604_v11  ;;  %v628_v34 = vmul.f32 0.25, %v612_v24 }
 0x39a   :  { %633 = vst [vmem:[#allocation5 + $0x20] sm:$0xff] %v617_v41  ;;  %641 = vst [vmem:[#allocation5 + $0x60] sm:$0xff] %v625_v5  ;;  %v618_v62 = vmul.f32 0.25, %v602_v58  ;;  %v626_v39 = vmul.f32 0.25, %v610_v0 }
 0x39b   :  { %636 = vst [vmem:[#allocation5 + $0x38] sm:$0xff] %v620_v52  ;;  %644 = vst [vmem:[#allocation5 + $0x78] sm:$0xff] %v628_v34 }
 0x39c   :  { %634 = vst [vmem:[#allocation5 + $0x28] sm:$0xff] %v618_v62  ;;  %642 = vst [vmem:[#allocation5 + $0x68] sm:$0xff] %v626_v39 }
 0x39d   :  { %862 = shalt.err (!%p859_p12)
}
 0x39e   :  { %s863_s12 = scalar_lea.hbm %s1379_s3, 2048 }
 0x39f   :  { %p864_p13 = scmp.ne.s32.totalorder %s1379_s3, %s863_s12  ;;  %p867_p0 = scmp.lt.u32.totalorder %s863_s12, %s1379_s3 }
 0x3a1   :  { %p869_p1 = pnand %p867_p0, %p864_p13 }
 0x3a3   :  { %872 = shalt.err (!%p869_p1)
}
 0x3a4   :  { %656 = dma.vmem_to_hbm [thread:$0]  %s651_s8, 2048, %s1379_s3, [#allocation4], %s878_s22, %s878_s22, %s879_s23  }
 0x3a5   :  { %875 = dma.done.wait [#allocation4], 2048  }
 0x3a6   :  { %876 = vsyncadd [#allocation4], 4294965248 }
 0x3a7   :  { %660 = vsyncpa [#allocation3], 1 }
 0x3a8   :  { %661 = vsyncpa [#allocation4], 1 }

</bundles_post_ra>
